<compile_context>
chip_gen: v5e
topology: v5e:2x2
jax: 0.10.0
libtpu: 0.0.40
codegen_flags: <defaults>
</compile_context>

<pallas_src>
import jax
import jax.numpy as jnp
from jax.experimental import pallas as pl
from jax.experimental.pallas import tpu as pltpu

IN_FEATURES = 784
OUT_PAD = 128    # 10 -> 128 lane-padded logits (lane-dense stores)


def _round_up(x, m):
    return ((x + m - 1) // m) * m


def fashion_dnn_kernel(x_ref, w1_ref, b1_ref, w2_ref, b2_ref, w3_ref, b3_ref,
                       o_ref):
    # In-kernel cast to bf16 (no extra HBM pass for x).
    x = x_ref[...].astype(jnp.bfloat16)

    # fc1 + ReLU: (tile_b, 784) @ (784, 256) -> (tile_b, 256), f32 accumulate.
    h1 = jnp.dot(x, w1_ref[...], preferred_element_type=jnp.float32)
    h1 = jnp.maximum(h1 + b1_ref[...], 0.0)

    # Dropout(0.25): identity in eval / inference mode.

    # fc2 + ReLU: (tile_b, 256) @ (256, 128) -> (tile_b, 128).
    h2 = jnp.dot(h1.astype(jnp.bfloat16), w2_ref[...],
                 preferred_element_type=jnp.float32)
    h2 = jnp.maximum(h2 + b2_ref[...], 0.0)

    # fc3 (logits, lane-padded to 128): (tile_b, 128) @ (128, 128).
    out = jnp.dot(h2.astype(jnp.bfloat16), w3_ref[...],
                  preferred_element_type=jnp.float32)
    o_ref[...] = (out + b3_ref[...]).astype(o_ref.dtype)


def prepare_params(params):
    """One-time prep: cast weights to bf16, lane-pad fc3, keep biases f32."""
    w1, b1, w2, b2, w3, b3 = params
    w1p = w1.astype(jnp.bfloat16)                                   # (784, 256)
    w2p = w2.astype(jnp.bfloat16)                                   # (256, 128)
    w3p = jnp.pad(w3.astype(jnp.bfloat16), ((0, 0), (0, OUT_PAD - 10)))
    b1p = b1.reshape(1, -1).astype(jnp.float32)                     # (1, 256)
    b2p = b2.reshape(1, -1).astype(jnp.float32)                     # (1, 128)
    b3p = jnp.pad(b3.reshape(1, -1).astype(jnp.float32),
                  ((0, 0), (0, OUT_PAD - 10)))                      # (1, 128)
    return (w1p, b1p, w2p, b2p, w3p, b3p)


def fashion_dnn_forward(x, prepared_params, *, tile_b=1024):
    """x: (B, 1, 28, 28) or (B, 784), f32 or bf16. Returns (B, 10) f32 logits."""
    w1p, b1p, w2p, b2p, w3p, b3p = prepared_params

    x2d = x.reshape(-1, IN_FEATURES)          # free reshape, no dtype change
    B = x2d.shape[0]

    # Sublane quantum: 8 rows for f32 inputs, 16 for packed (bf16) inputs.
    sub = 8 if x2d.dtype.itemsize >= 4 else 16

    # Sanitize the tile: always a sublane multiple; keep >=4 grid steps when
    # possible so v7x's two TensorCores both get work and the pipeline ramps.
    tile_b = _round_up(max(sub, int(tile_b)), sub)
    tile_b = min(tile_b, max(sub, _round_up(pl.cdiv(B, 4), sub)))
    Bp = _round_up(B, tile_b)
    if Bp != B:
        x2d = jnp.pad(x2d, ((0, Bp - B), (0, 0)))

    grid = (Bp // tile_b,)

    out = pl.pallas_call(
        fashion_dnn_kernel,
        out_shape=jax.ShapeDtypeStruct((Bp, OUT_PAD), jnp.bfloat16),
        grid_spec=pltpu.PrefetchScalarGridSpec(
            num_scalar_prefetch=0,
            grid=grid,
            in_specs=[
                pl.BlockSpec((tile_b, IN_FEATURES), lambda i: (i, 0)),  # x tile
                pl.BlockSpec((IN_FEATURES, 256), lambda i: (0, 0)),     # W1 bf16
                pl.BlockSpec((1, 256), lambda i: (0, 0)),               # b1 f32
                pl.BlockSpec((256, 128), lambda i: (0, 0)),             # W2 bf16
                pl.BlockSpec((1, 128), lambda i: (0, 0)),               # b2 f32
                pl.BlockSpec((128, OUT_PAD), lambda i: (0, 0)),         # W3 bf16
                pl.BlockSpec((1, OUT_PAD), lambda i: (0, 0)),           # b3 f32
            ],
            out_specs=pl.BlockSpec((tile_b, OUT_PAD), lambda i: (i, 0)),
        ),
        compiler_params=pltpu.CompilerParams(
            dimension_semantics=("parallel",),
            vmem_limit_bytes=32 << 20,   # headroom for f32 x tiles on v5e
        ),
    )(x2d, w1p, b1p, w2p, b2p, w3p, b3p)

    # Drop padded batch rows and padded output lanes; expose f32 like PyTorch.
    return out[:B, :10].astype(jnp.float32)


def init_params(key):
    """Deterministic init mimicking nn.Linear's U(-1/sqrt(fan_in), +1/sqrt(fan_in))."""
    def linear(k, fan_in, fan_out):
        kw, kb = jax.random.split(k)
        bound = 1.0 / jnp.sqrt(jnp.float32(fan_in))
        # Stored as (in, out) so the kernel computes x @ W.
        w = jax.random.uniform(kw, (fan_in, fan_out), jnp.float32, -bound, bound)
        b = jax.random.uniform(kb, (1, fan_out), jnp.float32, -bound, bound)
        return w, b

    k1, k2, k3 = jax.random.split(key, 3)
    w1, b1 = linear(k1, 784, 256)
    w2, b2 = linear(k2, 256, 128)
    w3, b3 = linear(k3, 128, 10)
    return (w1, b1, w2, b2, w3, b3)


def reference_forward(x, params):
    """Pure-JAX reference of the PyTorch forward (dropout in eval = identity),
    using the same bf16-operand / f32-accumulate arithmetic as the kernel."""
    w1, b1, w2, b2, w3, b3 = params
    h = x.reshape(-1, 784).astype(jnp.bfloat16)
    h = jnp.dot(h, w1.astype(jnp.bfloat16), preferred_element_type=jnp.float32)
    h = jnp.maximum(h + b1, 0.0)
    h = jnp.dot(h.astype(jnp.bfloat16), w2.astype(jnp.bfloat16),
                preferred_element_type=jnp.float32)
    h = jnp.maximum(h + b2, 0.0)
    out = jnp.dot(h.astype(jnp.bfloat16), w3.astype(jnp.bfloat16),
                  preferred_element_type=jnp.float32)
    return out + b3


if __name__ == "__main__":
    key = jax.random.PRNGKey(0)
    kx, kp = jax.random.split(key)
    params = init_params(kp)
    prepared = prepare_params(params)   # one-time weight cast/pad

    # Small Fashion-MNIST style input: (batch, 1, 28, 28) NCHW.
    x = jax.random.normal(kx, (8, 1, 28, 28), jnp.float32)
    out = jax.block_until_ready(fashion_dnn_forward(x, prepared))
    ref = reference_forward(x, params)
    assert out.shape == (8, 10), out.shape
    assert jnp.allclose(out, ref, atol=1e-2, rtol=1e-2), \
        float(jnp.max(jnp.abs(out - ref)))

    # Multi-step grid + batch padding/slicing.
    x2 = jax.random.normal(kx, (40, 1, 28, 28), jnp.float32)
    out2 = jax.block_until_ready(fashion_dnn_forward(x2, prepared, tile_b=16))
    ref2 = reference_forward(x2, params)
    assert out2.shape == (40, 10), out2.shape
    assert jnp.allclose(out2, ref2, atol=1e-2, rtol=1e-2), \
        float(jnp.max(jnp.abs(out2 - ref2)))

    # Non-multiple-of-8 user tile (exercises the tile sanitization path).
    x3 = jax.random.normal(kx, (24, 1, 28, 28), jnp.float32)
    out3 = jax.block_until_ready(fashion_dnn_forward(x3, prepared, tile_b=20))
    ref3 = reference_forward(x3, params)
    assert out3.shape == (24, 10), out3.shape
    assert jnp.allclose(out3, ref3, atol=1e-2, rtol=1e-2), \
        float(jnp.max(jnp.abs(out3 - ref3)))

    print("KERNEL_OK")
</pallas_src>

<mosaic_0001>
module attributes {stable_mosaic.version = 11 : i64} {
  func.func @fashion_dnn_kernel(%arg0: i32, %arg1: memref<8x784xf32, #tpu.memory_space<vmem>>, %arg2: memref<784x256xbf16, #tpu.memory_space<vmem>>, %arg3: memref<1x256xf32, #tpu.memory_space<vmem>>, %arg4: memref<256x128xbf16, #tpu.memory_space<vmem>>, %arg5: memref<1x128xf32, #tpu.memory_space<vmem>>, %arg6: memref<128x128xbf16, #tpu.memory_space<vmem>>, %arg7: memref<1x128xf32, #tpu.memory_space<vmem>>, %arg8: memref<8x128xbf16, #tpu.memory_space<vmem>>) attributes {dimension_semantics = [#tpu.dimension_semantics<parallel>], iteration_bounds = array<i64: 1>, scalar_prefetch = 0 : i64, scratch_operands = 0 : i64, tpu.core_type = #tpu.core_type<tc>, window_params = [{transform_indices = @transform_0, window_bounds = array<i64: 8, 784>}, {pipeline_mode = #tpu.pipeline_mode<synchronous>, transform_indices = @transform_1, window_bounds = array<i64: 784, 256>}, {pipeline_mode = #tpu.pipeline_mode<synchronous>, transform_indices = @transform_2, window_bounds = array<i64: 1, 256>}, {pipeline_mode = #tpu.pipeline_mode<synchronous>, transform_indices = @transform_3, window_bounds = array<i64: 256, 128>}, {pipeline_mode = #tpu.pipeline_mode<synchronous>, transform_indices = @transform_4, window_bounds = array<i64: 1, 128>}, {pipeline_mode = #tpu.pipeline_mode<synchronous>, transform_indices = @transform_5, window_bounds = array<i64: 128, 128>}, {pipeline_mode = #tpu.pipeline_mode<synchronous>, transform_indices = @transform_6, window_bounds = array<i64: 1, 128>}, {transform_indices = @transform_7, window_bounds = array<i64: 8, 128>}]} {
    %c0 = arith.constant 0 : index
    %c0_0 = arith.constant 0 : index
    %0 = vector.load %arg1[%c0, %c0_0] : memref<8x784xf32, #tpu.memory_space<vmem>>, vector<8x784xf32>
    %1 = arith.truncf %0 : vector<8x784xf32> to vector<8x784xbf16>
    %c0_1 = arith.constant 0 : index
    %c0_2 = arith.constant 0 : index
    %2 = vector.load %arg2[%c0_1, %c0_2] : memref<784x256xbf16, #tpu.memory_space<vmem>>, vector<784x256xbf16>
    %cst = arith.constant dense<0.000000e+00> : vector<8x256xf32>
    %3 = tpu.matmul %1, %2, %cst {dimension_numbers = #tpu.dot_dimension_numbers<[1], [0], [0], [1], [0, 0, 1, 1], [], []>} : vector<8x784xbf16>, vector<784x256xbf16>, vector<8x256xf32> -> vector<8x256xf32>
    %c0_3 = arith.constant 0 : index
    %c0_4 = arith.constant 0 : index
    %4 = vector.load %arg3[%c0_3, %c0_4] : memref<1x256xf32, #tpu.memory_space<vmem>>, vector<1x256xf32>
    %5 = vector.broadcast %4 : vector<1x256xf32> to vector<8x256xf32>
    %6 = arith.addf %3, %5 : vector<8x256xf32>
    %cst_5 = arith.constant 0.000000e+00 : f32
    %7 = vector.broadcast %cst_5 : f32 to vector<8x256xf32>
    %8 = arith.maximumf %6, %7 : vector<8x256xf32>
    %9 = arith.truncf %8 : vector<8x256xf32> to vector<8x256xbf16>
    %c0_6 = arith.constant 0 : index
    %c0_7 = arith.constant 0 : index
    %10 = vector.load %arg4[%c0_6, %c0_7] : memref<256x128xbf16, #tpu.memory_space<vmem>>, vector<256x128xbf16>
    %cst_8 = arith.constant dense<0.000000e+00> : vector<8x128xf32>
    %11 = tpu.matmul %9, %10, %cst_8 {dimension_numbers = #tpu.dot_dimension_numbers<[1], [0], [0], [1], [0, 0, 1, 1], [], []>} : vector<8x256xbf16>, vector<256x128xbf16>, vector<8x128xf32> -> vector<8x128xf32>
    %c0_9 = arith.constant 0 : index
    %c0_10 = arith.constant 0 : index
    %12 = vector.load %arg5[%c0_9, %c0_10] : memref<1x128xf32, #tpu.memory_space<vmem>>, vector<1x128xf32>
    %13 = vector.broadcast %12 : vector<1x128xf32> to vector<8x128xf32>
    %14 = arith.addf %11, %13 : vector<8x128xf32>
    %cst_11 = arith.constant 0.000000e+00 : f32
    %15 = vector.broadcast %cst_11 : f32 to vector<8x128xf32>
    %16 = arith.maximumf %14, %15 : vector<8x128xf32>
    %17 = arith.truncf %16 : vector<8x128xf32> to vector<8x128xbf16>
    %c0_12 = arith.constant 0 : index
    %c0_13 = arith.constant 0 : index
    %18 = vector.load %arg6[%c0_12, %c0_13] : memref<128x128xbf16, #tpu.memory_space<vmem>>, vector<128x128xbf16>
    %cst_14 = arith.constant dense<0.000000e+00> : vector<8x128xf32>
    %19 = tpu.matmul %17, %18, %cst_14 {dimension_numbers = #tpu.dot_dimension_numbers<[1], [0], [0], [1], [0, 0, 1, 1], [], []>} : vector<8x128xbf16>, vector<128x128xbf16>, vector<8x128xf32> -> vector<8x128xf32>
    %c0_15 = arith.constant 0 : index
    %c0_16 = arith.constant 0 : index
    %20 = vector.load %arg7[%c0_15, %c0_16] : memref<1x128xf32, #tpu.memory_space<vmem>>, vector<1x128xf32>
    %21 = vector.broadcast %20 : vector<1x128xf32> to vector<8x128xf32>
    %22 = arith.addf %19, %21 : vector<8x128xf32>
    %23 = arith.truncf %22 : vector<8x128xf32> to vector<8x128xbf16>
    %c0_17 = arith.constant 0 : index
    %c0_18 = arith.constant 0 : index
    %24 = vector.load %arg8[%c0_17, %c0_18] : memref<8x128xbf16, #tpu.memory_space<vmem>>, vector<8x128xbf16>
    tpu.vector_store %arg8[%c0_17, %c0_18], %23 {strides = array<i32>} : memref<8x128xbf16, #tpu.memory_space<vmem>>, vector<8x128xbf16>,
    return
  }
  func.func @transform_0(%arg0: i32) -> (i32, i32) {
    %c0_i32 = arith.constant 0 : i32
    %c0_i32_0 = arith.constant 0 : i32
    return %arg0, %c0_i32 : i32, i32
  }
  func.func @transform_1(%arg0: i32) -> (i32, i32) {
    %c0_i32 = arith.constant 0 : i32
    %c0_i32_0 = arith.constant 0 : i32
    %c0_i32_1 = arith.constant 0 : i32
    return %c0_i32, %c0_i32_0 : i32, i32
  }
  func.func @transform_2(%arg0: i32) -> (i32, i32) {
    %c0_i32 = arith.constant 0 : i32
    %c0_i32_0 = arith.constant 0 : i32
    %c0_i32_1 = arith.constant 0 : i32
    return %c0_i32, %c0_i32_0 : i32, i32
  }
  func.func @transform_3(%arg0: i32) -> (i32, i32) {
    %c0_i32 = arith.constant 0 : i32
    %c0_i32_0 = arith.constant 0 : i32
    %c0_i32_1 = arith.constant 0 : i32
    return %c0_i32, %c0_i32_0 : i32, i32
  }
  func.func @transform_4(%arg0: i32) -> (i32, i32) {
    %c0_i32 = arith.constant 0 : i32
    %c0_i32_0 = arith.constant 0 : i32
    %c0_i32_1 = arith.constant 0 : i32
    return %c0_i32, %c0_i32_0 : i32, i32
  }
  func.func @transform_5(%arg0: i32) -> (i32, i32) {
    %c0_i32 = arith.constant 0 : i32
    %c0_i32_0 = arith.constant 0 : i32
    %c0_i32_1 = arith.constant 0 : i32
    return %c0_i32, %c0_i32_0 : i32, i32
  }
  func.func @transform_6(%arg0: i32) -> (i32, i32) {
    %c0_i32 = arith.constant 0 : i32
    %c0_i32_0 = arith.constant 0 : i32
    %c0_i32_1 = arith.constant 0 : i32
    return %c0_i32, %c0_i32_0 : i32, i32
  }
  func.func @transform_7(%arg0: i32) -> (i32, i32) {
    %c0_i32 = arith.constant 0 : i32
    %c0_i32_0 = arith.constant 0 : i32
    return %arg0, %c0_i32 : i32, i32
  }
}

</mosaic_0001>

<bundles_post_ra>
// kernel: tpu_custom_call.1
= control target key start
LH: loop header
LB: loop body
LE: loop exit
PB: predicated region body
PF: predicated region fallthrough
CT: control target
= control target key end

     0   :  { %12 = vsyncpa [#allocation3], 0  ;;  %s2042_s0 = inlined_call_operand.hbm [shape: f32[8,784], index: 0, kind: input, shape index: {}]   ;;  %s2043_s1 = inlined_call_operand.hbm [shape: bf16[784,256], index: 1, kind: input, shape index: {}]   ;;  %s2044_s2 = inlined_call_operand.hbm [shape: f32[1,256], index: 2, kind: input, shape index: {}]   ;;  %s2045_s3 = inlined_call_operand.hbm [shape: bf16[256,128], index: 3, kind: input, shape index: {}]   ;;  %s2046_s4 = inlined_call_operand.vmem [shape: f32[1,128], index: 4, kind: input, shape index: {}]   ;;  %s2047_s5 = inlined_call_operand.hbm [shape: bf16[128,128], index: 5, kind: input, shape index: {}]   ;;  %s2048_s6 = inlined_call_operand.vmem [shape: f32[1,128], index: 6, kind: input, shape index: {}]   ;;  %s2049_s7 = inlined_call_operand.hbm [shape: bf16[8,128], index: 7, kind: output, shape index: {}]  }
   0x1   :  { %13 = vsyncpa [#allocation6], 0 }
   0x2   :  { %14 = vsyncpa [#allocation9], 0  ;;  %s31_s26 = sshll.u32 %s2043_s1, 4  ;;  %s32_s26 = int_to_ptr.hbm [resolvable:$true] %s31_s26 }
   0x3   :  { %15 = vsyncpa [#allocation4], 0  ;;  %s1938_s27 = smov [#allocation5]   ;;  %s55_s8 = sshll.u32 %s2045_s3, 4  ;;  %s56_s8 = int_to_ptr.hbm [resolvable:$true] %s55_s8 }
   0x4   :  { %s33_s28 = sshll.u32 %s1938_s27, 4  ;;  %s1939_s9 = smov 128   ;;  %s34_s28 = int_to_ptr.vmem [resolvable:$true] %s33_s28 }
   0x5   :  { %s1940_s10 = smov 8   ;;  %s1941_s11 = smov [#allocation8]  }
   0x6   :  { %39 = dma.hbm_to_vmem [thread:$0]  %s32_s26, 12544, %s34_s28, [#allocation6], %s1939_s9, %s1939_s9, %s1940_s10  }
   0x7   :  { %s57_s12 = sshll.u32 %s1941_s11, 4  ;;  %s1942_s13 = smov 64   ;;  %s58_s12 = int_to_ptr.vmem [resolvable:$true] %s57_s12 }
   0x8   :  { %s1943_s14 = smov 4   ;;  %s21_s16 = sshll.u32 %s2042_s0, 4  ;;  %s22_s16 = int_to_ptr.hbm [resolvable:$true] %s21_s16 }
   0x9   :  { %63 = dma.hbm_to_vmem [thread:$0]  %s56_s8, 2048, %s58_s12, [#allocation9], %s1942_s13, %s1942_s13, %s1943_s14  }
   0xa   :  { %s1944_s17 = smov [#allocation2]   ;;  %s45_s20 = sshll.u32 %s2044_s2, 4  ;;  %s46_s20 = int_to_ptr.hbm [resolvable:$true] %s45_s20 }
   0xb   :  { %s23_s18 = sshll.u32 %s1944_s17, 4  ;;  %s1945_s21 = smov [#allocation7]   ;;  %s24_s18 = int_to_ptr.vmem [resolvable:$true] %s23_s18 }
   0xc   :  { %26 = dma.hbm_to_vmem [thread:$0]  %s22_s16, 896, %s24_s18, [#allocation3]  }
   0xd   :  { %s47_s22 = sshll.u32 %s1945_s21, 4  ;;  %s70_s25 = sshll.u32 %s2047_s5, 4  ;;  %s48_s22 = int_to_ptr.vmem [resolvable:$true] %s47_s22  ;;  %s71_s25 = int_to_ptr.hbm [resolvable:$true] %s70_s25 }
   0xe   :  { %50 = dma.hbm_to_vmem [thread:$0]  %s46_s20, 32, %s48_s22, [#allocation6]  }
   0xf   :  { %s1946_s0 = smov [#allocation10]  }
  0x10   :  { %s72_s26 = sshll.u32 %s1946_s0, 4  ;;  %s73_s26 = int_to_ptr.vmem [resolvable:$true] %s72_s26 }
  0x11   :  { %78 = dma.hbm_to_vmem [thread:$0]  %s71_s25, 1024, %s73_s26, [#allocation9], %s1942_s13, %s1942_s13, %s1943_s14  }
  0x12   :  { %1930 = dma.done.wait [#allocation3], 896  }
  0x13   :  { %1931 = vsyncadd [#allocation3], 4294966400 }
  0x14   :  { %1932 = dma.done.wait [#allocation6], 12576  }
  0x15   :  { %1933 = vsyncadd [#allocation6], 4294954720 }
  0x16   :  { %1934 = dma.done.wait [#allocation9], 3072  }
  0x17   :  { %1935 = vsyncadd [#allocation9], 4294964224  ;;  %v1220_v0 = vld [vmem:[#allocation5 + $0x70] sm:$0xf]  ;;  %v1667_v1 = vld [vmem:[#allocation5 + $0x74] sm:$0xf0] }
  0x18   :  { %v1348_v2 = vld [vmem:[#allocation5 + $0x170] sm:$0xf]  ;;  %v1221_v3 = vor.u32 %v1667_v1, %v1220_v0  ;;  %v1699_v4 = vld [vmem:[#allocation5 + $0x174] sm:$0xf0]  ;;  %v1212_v11 = vld [vmem:[#allocation5 + $0x60] sm:$0xf] }
  0x19   :  { %v1412_v5 = vld [vmem:[#allocation5 + $0x1f0] sm:$0xf]  ;;  %v1715_v6 = vld [vmem:[#allocation5 + $0x1f4] sm:$0xf0]  ;;  %v1349_v7 = vor.u32 %v1699_v4, %v1348_v2  ;;  %v1665_v13 = vld [vmem:[#allocation5 + $0x64] sm:$0xf0] }
  0x1a   :  { %v1413_v8 = vor.u32 %v1715_v6, %v1412_v5  ;;  %v1284_v9 = vld [vmem:[#allocation5 + $0xf0] sm:$0xf]  ;;  %v1683_v10 = vld [vmem:[#allocation5 + $0xf4] sm:$0xf0]  ;;  %714 = vmatpush.bf16.msra.mxu0 %v1221_v3  ;;  %v1340_v14 = vld [vmem:[#allocation5 + $0x160] sm:$0xf]  ;;  %v1213_v16 = vor.u32 %v1665_v13, %v1212_v11 }
  0x1b   :  { %v1285_v12 = vor.u32 %v1683_v10, %v1284_v9  ;;  %v1697_v15 = vld [vmem:[#allocation5 + $0x164] sm:$0xf0]  ;;  %740 = vmatpush.bf16.msra.mxu2 %v1349_v7  ;;  %v1404_v18 = vld [vmem:[#allocation5 + $0x1e0] sm:$0xf]  ;;  %v1204_v23 = vld [vmem:[#allocation5 + $0x50] sm:$0xf] }
  0x1c   :  { %753 = vmatpush.bf16.msra.mxu3 %v1413_v8  ;;  %v1341_v17 = vor.u32 %v1697_v15, %v1340_v14  ;;  %v1713_v19 = vld [vmem:[#allocation5 + $0x1e4] sm:$0xf0]  ;;  %v1276_v20 = vld [vmem:[#allocation5 + $0xe0] sm:$0xf]  ;;  %v1663_v24 = vld [vmem:[#allocation5 + $0x54] sm:$0xf0] }
  0x1d   :  { %727 = vmatpush.bf16.msra.mxu1 %v1285_v12  ;;  %v1405_v21 = vor.u32 %v1713_v19, %v1404_v18  ;;  %v1681_v22 = vld [vmem:[#allocation5 + $0xe4] sm:$0xf0]  ;;  %v1332_v26 = vld [vmem:[#allocation5 + $0x150] sm:$0xf]  ;;  %v1695_v27 = vld [vmem:[#allocation5 + $0x154] sm:$0xf0]  ;;  %v1205_v29 = vor.u32 %v1663_v24, %v1204_v23 }
  0x1e   :  { %v1277_v25 = vor.u32 %v1681_v22, %v1276_v20  ;;  %v1396_v28 = vld [vmem:[#allocation5 + $0x1d0] sm:$0xf]  ;;  %715 = vmatpush.bf16.msra.mxu0 %v1213_v16  ;;  %v1711_v30 = vld [vmem:[#allocation5 + $0x1d4] sm:$0xf0]  ;;  %v1333_v33 = vor.u32 %v1695_v27, %v1332_v26  ;;  %v1196_v35 = vld [vmem:[#allocation5 + $0x40] sm:$0xf] }
  0x1f   :  { %v1268_v31 = vld [vmem:[#allocation5 + $0xd0] sm:$0xf]  ;;  %v1679_v32 = vld [vmem:[#allocation5 + $0xd4] sm:$0xf0]  ;;  %741 = vmatpush.bf16.msra.mxu2 %v1341_v17  ;;  %v1397_v34 = vor.u32 %v1711_v30, %v1396_v28  ;;  %v1661_v36 = vld [vmem:[#allocation5 + $0x44] sm:$0xf0] }
  0x20   :  { %754 = vmatpush.bf16.msra.mxu3 %v1405_v21  ;;  %v1324_v37 = vld [vmem:[#allocation5 + $0x140] sm:$0xf]  ;;  %v1269_v38 = vor.u32 %v1679_v32, %v1268_v31  ;;  %v1693_v39 = vld [vmem:[#allocation5 + $0x144] sm:$0xf0]  ;;  %v1197_v44 = vor.u32 %v1661_v36, %v1196_v35  ;;  %v1188_v47 = vld [vmem:[#allocation5 + $0x30] sm:$0xf] }
  0x21   :  { %728 = vmatpush.bf16.msra.mxu1 %v1277_v25  ;;  %v1388_v40 = vld [vmem:[#allocation5 + $0x1c0] sm:$0xf]  ;;  %v1709_v41 = vld [vmem:[#allocation5 + $0x1c4] sm:$0xf0]  ;;  %v1325_v45 = vor.u32 %v1693_v39, %v1324_v37  ;;  %v1659_v48 = vld [vmem:[#allocation5 + $0x34] sm:$0xf0] }
  0x22   :  { %v1260_v42 = vld [vmem:[#allocation5 + $0xc0] sm:$0xf]  ;;  %v1677_v43 = vld [vmem:[#allocation5 + $0xc4] sm:$0xf0]  ;;  %716 = vmatpush.bf16.msra.mxu0 %v1205_v29  ;;  %v1389_v46 = vor.u32 %v1709_v41, %v1388_v40  ;;  %v1316_v49 = vld [vmem:[#allocation5 + $0x130] sm:$0xf]  ;;  %v1189_v56 = vor.u32 %v1659_v48, %v1188_v47 }
  0x23   :  { %742 = vmatpush.bf16.msra.mxu2 %v1333_v33  ;;  %v1261_v50 = vor.u32 %v1677_v43, %v1260_v42  ;;  %v1691_v51 = vld [vmem:[#allocation5 + $0x134] sm:$0xf0]  ;;  %v1380_v52 = vld [vmem:[#allocation5 + $0x1b0] sm:$0xf]  ;;  %v1180_v59 = vld [vmem:[#allocation5 + $0x20] sm:$0xf] }
  0x24   :  { %755 = vmatpush.bf16.msra.mxu3 %v1397_v34  ;;  %v1707_v53 = vld [vmem:[#allocation5 + $0x1b4] sm:$0xf0]  ;;  %v1252_v54 = vld [vmem:[#allocation5 + $0xb0] sm:$0xf]  ;;  %v1317_v57 = vor.u32 %v1691_v51, %v1316_v49  ;;  %v1657_v60 = vld [vmem:[#allocation5 + $0x24] sm:$0xf0] }
  0x25   :  { %729 = vmatpush.bf16.msra.mxu1 %v1269_v38  ;;  %v1675_v55 = vld [vmem:[#allocation5 + $0xb4] sm:$0xf0]  ;;  %v1381_v58 = vor.u32 %v1707_v53, %v1380_v52  ;;  %v1308_v61 = vld [vmem:[#allocation5 + $0x120] sm:$0xf]  ;;  %v1689_v63 = vld [vmem:[#allocation5 + $0x124] sm:$0xf0]  ;;  %v1181_v4 = vor.u32 %v1657_v60, %v1180_v59 }
  0x26   :  { %717 = vmatpush.bf16.msra.mxu0 %v1197_v44  ;;  %v1253_v62 = vor.u32 %v1675_v55, %v1252_v54  ;;  %v1372_v0 = vld [vmem:[#allocation5 + $0x1a0] sm:$0xf]  ;;  %v1705_v1 = vld [vmem:[#allocation5 + $0x1a4] sm:$0xf0]  ;;  %v1309_v5 = vor.u32 %v1689_v63, %v1308_v61  ;;  %v1172_v7 = vld [vmem:[#allocation5 + $0x10] sm:$0xf] }
  0x27   :  { %743 = vmatpush.bf16.msra.mxu2 %v1325_v45  ;;  %v1244_v2 = vld [vmem:[#allocation5 + $0xa0] sm:$0xf]  ;;  %v1673_v3 = vld [vmem:[#allocation5 + $0xa4] sm:$0xf0]  ;;  %v1373_v6 = vor.u32 %v1705_v1, %v1372_v0  ;;  %v1655_v8 = vld [vmem:[#allocation5 + $0x14] sm:$0xf0] }
  0x28   :  { %756 = vmatpush.bf16.msra.mxu3 %v1389_v46  ;;  %v1300_v9 = vld [vmem:[#allocation5 + $0x110] sm:$0xf]  ;;  %v1245_v10 = vor.u32 %v1673_v3, %v1244_v2  ;;  %v1687_v11 = vld [vmem:[#allocation5 + $0x114] sm:$0xf0]  ;;  %v1173_v16 = vor.u32 %v1655_v8, %v1172_v7  ;;  %v1164_v17 = vld [vmem:[#allocation5] sm:$0xf] }
  0x29   :  { %730 = vmatpush.bf16.msra.mxu1 %v1261_v50  ;;  %v1364_v12 = vld [vmem:[#allocation5 + $0x190] sm:$0xf]  ;;  %v1703_v13 = vld [vmem:[#allocation5 + $0x194] sm:$0xf0]  ;;  %v1653_v18 = vld [vmem:[#allocation5 + $0x4] sm:$0xf0]  ;;  %v1301_v20 = vor.u32 %v1687_v11, %v1300_v9 }
  0x2a   :  { %718 = vmatpush.bf16.msra.mxu0 %v1189_v56  ;;  %v1236_v14 = vld [vmem:[#allocation5 + $0x90] sm:$0xf]  ;;  %v1671_v15 = vld [vmem:[#allocation5 + $0x94] sm:$0xf0]  ;;  %v1292_v19 = vld [vmem:[#allocation5 + $0x100] sm:$0xf]  ;;  %v1365_v21 = vor.u32 %v1703_v13, %v1364_v12  ;;  %v1165_v32 = vor.u32 %v1653_v18, %v1164_v17 }
  0x2b   :  { %744 = vmatpush.bf16.msra.mxu2 %v1317_v57  ;;  %v1685_v22 = vld [vmem:[#allocation5 + $0x104] sm:$0xf0]  ;;  %v1356_v23 = vld [vmem:[#allocation5 + $0x180] sm:$0xf]  ;;  %v1237_v25 = vor.u32 %v1671_v15, %v1236_v14  ;;  %v1476_v26 = vld [vmem:[#allocation5 + $0x270] sm:$0xf] }
  0x2c   :  { %757 = vmatpush.bf16.msra.mxu3 %v1381_v58  ;;  %v1701_v24 = vld [vmem:[#allocation5 + $0x184] sm:$0xf0]  ;;  %v1731_v27 = vld [vmem:[#allocation5 + $0x274] sm:$0xf0]  ;;  %v1666_v28 = vld [vmem:[#allocation5 + $0x74] sm:$0xf]  ;;  %v1293_v36 = vor.u32 %v1685_v22, %v1292_v19 }
  0x2d   :  { %731 = vmatpush.bf16.msra.mxu1 %v1253_v62  ;;  %v1222_v29 = vld [vmem:[#allocation5 + $0x78] sm:$0xf0]  ;;  %v1228_v30 = vld [vmem:[#allocation5 + $0x80] sm:$0xf]  ;;  %v1669_v31 = vld [vmem:[#allocation5 + $0x84] sm:$0xf0]  ;;  %v1357_v37 = vor.u32 %v1701_v24, %v1356_v23  ;;  %v1477_v41 = vor.u32 %v1731_v27, %v1476_v26 }
  0x2e   :  { %719 = vmatpush.bf16.msra.mxu0 %v1181_v4  ;;  %v104_v33 = vld [vmem:[#allocation2 + $0x10] sm:$0xff]  ;;  %v1548_v34 = vld [vmem:[#allocation5 + $0x300] sm:$0xf]  ;;  %v1749_v35 = vld [vmem:[#allocation5 + $0x304] sm:$0xf0]  ;;  %v1225_v42 = vor.u32 %v1666_v28, %v1222_v29  ;;  %v1229_v46 = vor.u32 %v1669_v31, %v1228_v30  ;;  %vm710_vm0 = vcmask 130048  }
  0x2f   :  { %745 = vmatpush.bf16.msra.mxu2 %v1309_v5  ;;  %v1540_v38 = vld [vmem:[#allocation5 + $0x2f0] sm:$0xf]  ;;  %v1747_v39 = vld [vmem:[#allocation5 + $0x2f4] sm:$0xf0]  ;;  %v1682_v40 = vld [vmem:[#allocation5 + $0xf4] sm:$0xf]  ;;  %v1549_v47 = vor.u32 %v1749_v35, %v1548_v34  ;;  %v2003_v51 = vpack.c.bf16 %v104_v33, %v104_v33 }
  0x30   :  { %758 = vmatpush.bf16.msra.mxu3 %v1373_v6  ;;  %v1286_v43 = vld [vmem:[#allocation5 + $0xf8] sm:$0xf0]  ;;  %v1468_v44 = vld [vmem:[#allocation5 + $0x260] sm:$0xf]  ;;  %v102_v45 = vld [vmem:[#allocation2] sm:$0xff]  ;;  %v1541_v52 = vor.u32 %v1747_v39, %v1540_v38  ;;  %s1947_s29 = smov [#allocation11]  }
  0x31   :  { %732 = vmatpush.bf16.msra.mxu1 %v1245_v10  ;;  %v1729_v48 = vld [vmem:[#allocation5 + $0x264] sm:$0xf0]  ;;  %v1664_v49 = vld [vmem:[#allocation5 + $0x64] sm:$0xf]  ;;  %v1214_v50 = vld [vmem:[#allocation5 + $0x68] sm:$0xf0]  ;;  %v1289_v55 = vor.u32 %v1682_v40, %v1286_v43  ;;  %v2005_v56 = vpack.c.bf16 %v102_v45, %v102_v45 }
  0x32   :  { %720 = vmatpush.bf16.msra.mxu0 %v1173_v16  ;;  %v105_v53 = vld [vmem:[#allocation2 + $0x18] sm:$0xff]  ;;  %v103_v54 = vld [vmem:[#allocation2 + $0x8] sm:$0xff]  ;;  %v1745_v58 = vld [vmem:[#allocation5 + $0x2e4] sm:$0xf0]  ;;  %v1469_v59 = vor.u32 %v1729_v48, %v1468_v44  ;;  %v1217_v60 = vor.u32 %v1664_v49, %v1214_v50  ;;  %s1148_s30 = sshll.u32 %s1947_s29, 4  ;;  %s1150_s10 = sshll.u32 %s2049_s7, 4  ;;  %s1149_s30 = int_to_ptr.vmem [resolvable:$true] %s1148_s30  ;;  %s1151_s10 = int_to_ptr.hbm [resolvable:$true] %s1150_s10 }
  0x33   :  { %746 = vmatpush.bf16.msra.mxu2 %v1301_v20  ;;  %v1532_v57 = vld [vmem:[#allocation5 + $0x2e0] sm:$0xf]  ;;  %v1680_v61 = vld [vmem:[#allocation5 + $0xe4] sm:$0xf]  ;;  %v1278_v62 = vld [vmem:[#allocation5 + $0xe8] sm:$0xf0]  ;;  %v2007_v0 = vpack.c.bf16 %v105_v53, %v105_v53  ;;  %v2009_v1 = vpack.c.bf16 %v103_v54, %v103_v54 }
  0x34   :  { %759 = vmatpush.bf16.msra.mxu3 %v1365_v21  ;;  %v1460_v63 = vld [vmem:[#allocation5 + $0x250] sm:$0xf]  ;;  %v1727_v2 = vld [vmem:[#allocation5 + $0x254] sm:$0xf0]  ;;  %v1662_v3 = vld [vmem:[#allocation5 + $0x54] sm:$0xf]  ;;  %v1533_v5 = vor.u32 %v1745_v58, %v1532_v57  ;;  %v1281_v6 = vor.u32 %v1680_v61, %v1278_v62 }
  0x35   :  { %733 = vmatpush.bf16.msra.mxu1 %v1237_v25  ;;  %v1206_v4 = vld [vmem:[#allocation5 + $0x58] sm:$0xf0]  ;;  %v1524_v7 = vld [vmem:[#allocation5 + $0x2d0] sm:$0xf]  ;;  %v1743_v8 = vld [vmem:[#allocation5 + $0x2d4] sm:$0xf0]  ;;  %v1461_v9 = vor.u32 %v1727_v2, %v1460_v63 }
  0x36   :  { %721 = vmatpush.bf16.msra.mxu0 %v1165_v32  ;;  %v1209_v10 = vor.u32 %v1662_v3, %v1206_v4  ;;  %v1678_v11 = vld [vmem:[#allocation5 + $0xd4] sm:$0xf]  ;;  %v1270_v12 = vld [vmem:[#allocation5 + $0xd8] sm:$0xf0]  ;;  %v1452_v13 = vld [vmem:[#allocation5 + $0x240] sm:$0xf]  ;;  %v1525_v17 = vor.u32 %v1743_v8, %v1524_v7 }
  0x37   :  { %747 = vmatpush.bf16.msra.mxu2 %v1293_v36  ;;  %v1725_v14 = vld [vmem:[#allocation5 + $0x244] sm:$0xf0]  ;;  %v1660_v15 = vld [vmem:[#allocation5 + $0x44] sm:$0xf]  ;;  %v1198_v16 = vld [vmem:[#allocation5 + $0x48] sm:$0xf0]  ;;  %v1273_v18 = vor.u32 %v1678_v11, %v1270_v12 }
  0x38   :  { %760 = vmatpush.bf16.msra.mxu3 %v1357_v37  ;;  %v1516_v19 = vld [vmem:[#allocation5 + $0x2c0] sm:$0xf]  ;;  %v1741_v20 = vld [vmem:[#allocation5 + $0x2c4] sm:$0xf0]  ;;  %v1453_v21 = vor.u32 %v1725_v14, %v1452_v13  ;;  %v1201_v22 = vor.u32 %v1660_v15, %v1198_v16  ;;  %v1676_v23 = vld [vmem:[#allocation5 + $0xc4] sm:$0xf] }
  0x39   :  { %734 = vmatpush.bf16.msra.mxu1 %v1229_v46  ;;  %722 = vmatmul.bf16.vlgmr.msra.gmra.mxu0 %v2005_v56  ;;  %v1262_v24 = vld [vmem:[#allocation5 + $0xc8] sm:$0xf0]  ;;  %v1444_v25 = vld [vmem:[#allocation5 + $0x230] sm:$0xf]  ;;  %v1723_v26 = vld [vmem:[#allocation5 + $0x234] sm:$0xf0]  ;;  %v1517_v29 = vor.u32 %v1741_v20, %v1516_v19 }
  0x3a   :  { %766 = vmatpush.bf16.msrb.mxu0 %v1477_v41  ;;  %748 = vmatmul.bf16.vlgmr.msra.gmra.mxu2 %v2003_v51  ;;  %v1658_v27 = vld [vmem:[#allocation5 + $0x34] sm:$0xf]  ;;  %v1190_v28 = vld [vmem:[#allocation5 + $0x38] sm:$0xf0]  ;;  %v1265_v30 = vor.u32 %v1676_v23, %v1262_v24  ;;  %v1508_v31 = vld [vmem:[#allocation5 + $0x2b0] sm:$0xf]  ;;  %v1445_v34 = vor.u32 %v1723_v26, %v1444_v25 }
  0x3b   :  { %799 = vmatpush.bf16.msrb.mxu2 %v1549_v47  ;;  %761 = vmatmul.bf16.vlgmr.msra.gmra.mxu3 %v2007_v0  ;;  %v1739_v32 = vld [vmem:[#allocation5 + $0x2b4] sm:$0xf0]  ;;  %v1193_v35 = vor.u32 %v1658_v27, %v1190_v28  ;;  %v1674_v36 = vld [vmem:[#allocation5 + $0xb4] sm:$0xf]  ;;  %v1254_v37 = vld [vmem:[#allocation5 + $0xb8] sm:$0xf0] }
  0x3c   :  { %805 = vmatpush.bf16.msrb.mxu3 %v1225_v42  ;;  %735 = vmatmul.bf16.vlgmr.msra.gmra.mxu1 %v2009_v1  ;;  %v108_v33 = vld [vmem:[#allocation2 + $0x30] sm:$0xff]  ;;  %v1436_v38 = vld [vmem:[#allocation5 + $0x220] sm:$0xf]  ;;  %v1721_v39 = vld [vmem:[#allocation5 + $0x224] sm:$0xf0]  ;;  %v1509_v42 = vor.u32 %v1739_v32, %v1508_v31  ;;  %v1257_v44 = vor.u32 %v1674_v36, %v1254_v37 }
  0x3d   :  { %779 = vmatpush.bf16.msrb.mxu1 %v1541_v52  ;;  %v1656_v40 = vld [vmem:[#allocation5 + $0x24] sm:$0xf]  ;;  %v1182_v41 = vld [vmem:[#allocation5 + $0x28] sm:$0xf0]  ;;  %v2015_v43 = vpack.c.bf16 %v108_v33, %v108_v33  ;;  %v1500_v45 = vld [vmem:[#allocation5 + $0x2a0] sm:$0xf]  ;;  %v1437_v47 = vor.u32 %v1721_v39, %v1436_v38 }
  0x3e   :  { %767 = vmatpush.bf16.msrb.mxu0 %v1469_v59  ;;  %v1737_v46 = vld [vmem:[#allocation5 + $0x2a4] sm:$0xf0]  ;;  %v1185_v48 = vor.u32 %v1656_v40, %v1182_v41  ;;  %v1672_v49 = vld [vmem:[#allocation5 + $0xa4] sm:$0xf]  ;;  %v1246_v50 = vld [vmem:[#allocation5 + $0xa8] sm:$0xf0] }
  0x3f   :  { %818 = vmatpush.bf16.msra.mxu2 %v1289_v55  ;;  %v1428_v52 = vld [vmem:[#allocation5 + $0x210] sm:$0xf]  ;;  %v1719_v53 = vld [vmem:[#allocation5 + $0x214] sm:$0xf0]  ;;  %v1654_v54 = vld [vmem:[#allocation5 + $0x14] sm:$0xf]  ;;  %v1501_v57 = vor.u32 %v1737_v46, %v1500_v45  ;;  %v1249_v58 = vor.u32 %v1672_v49, %v1246_v50 }
  0x40   :  { %806 = vmatpush.bf16.msrb.mxu3 %v1217_v60  ;;  %v1174_v55 = vld [vmem:[#allocation5 + $0x18] sm:$0xf0]  ;;  %v1492_v59 = vld [vmem:[#allocation5 + $0x290] sm:$0xf]  ;;  %v1735_v60 = vld [vmem:[#allocation5 + $0x294] sm:$0xf0]  ;;  %v1429_v62 = vor.u32 %v1719_v53, %v1428_v52 }
  0x41   :  { %780 = vmatpush.bf16.msrb.mxu1 %v1533_v5  ;;  %v1670_v61 = vld [vmem:[#allocation5 + $0x94] sm:$0xf]  ;;  %v1177_v63 = vor.u32 %v1654_v54, %v1174_v55  ;;  %v1238_v2 = vld [vmem:[#allocation5 + $0x98] sm:$0xf0]  ;;  %v1420_v3 = vld [vmem:[#allocation5 + $0x200] sm:$0xf]  ;;  %v1493_v8 = vor.u32 %v1735_v60, %v1492_v59 }
  0x42   :  { %768 = vmatpush.bf16.msrb.mxu0 %v1461_v9  ;;  %v1717_v4 = vld [vmem:[#allocation5 + $0x204] sm:$0xf0]  ;;  %v1652_v5 = vld [vmem:[#allocation5 + $0x4] sm:$0xf]  ;;  %v1698_v7 = vld [vmem:[#allocation5 + $0x174] sm:$0xf]  ;;  %v1241_v12 = vor.u32 %v1670_v61, %v1238_v2 }
  0x43   :  { %819 = vmatpush.bf16.msra.mxu2 %v1281_v6  ;;  %v1166_v6 = vld [vmem:[#allocation5 + $0x8] sm:$0xf0]  ;;  %v1350_v9 = vld [vmem:[#allocation5 + $0x178] sm:$0xf0]  ;;  %v1484_v13 = vld [vmem:[#allocation5 + $0x280] sm:$0xf]  ;;  %v1421_v16 = vor.u32 %v1717_v4, %v1420_v3 }
  0x44   :  { %807 = vmatpush.bf16.msrb.mxu3 %v1209_v10  ;;  %v1730_v10 = vld [vmem:[#allocation5 + $0x274] sm:$0xf]  ;;  %v1478_v11 = vld [vmem:[#allocation5 + $0x278] sm:$0xf0]  ;;  %v1733_v14 = vld [vmem:[#allocation5 + $0x284] sm:$0xf0] }
  0x45   :  { %781 = vmatpush.bf16.msrb.mxu1 %v1525_v17  ;;  %v106_v15 = vld [vmem:[#allocation2 + $0x20] sm:$0xff]  ;;  %v1169_v17 = vor.u32 %v1652_v5, %v1166_v6  ;;  %v1714_v20 = vld [vmem:[#allocation5 + $0x1f4] sm:$0xf]  ;;  %v1414_v23 = vld [vmem:[#allocation5 + $0x1f8] sm:$0xf0]  ;;  %v1485_v26 = vor.u32 %v1733_v14, %v1484_v13 }
  0x46   :  { %769 = vmatpush.bf16.msrb.mxu0 %v1453_v21  ;;  %v1230_v19 = vld [vmem:[#allocation5 + $0x88] sm:$0xf0]  ;;  %v1353_v21 = vor.u32 %v1698_v7, %v1350_v9  ;;  %v1746_v24 = vld [vmem:[#allocation5 + $0x2f4] sm:$0xf]  ;;  %v1542_v25 = vld [vmem:[#allocation5 + $0x2f8] sm:$0xf0] }
  0x47   :  { %820 = vmatpush.bf16.msra.mxu2 %v1273_v18  ;;  %v1668_v18 = vld [vmem:[#allocation5 + $0x84] sm:$0xf]  ;;  %v107_v27 = vld [vmem:[#allocation2 + $0x28] sm:$0xff]  ;;  %v1470_v33 = vld [vmem:[#allocation5 + $0x268] sm:$0xf0] }
  0x48   :  { %808 = vmatpush.bf16.msrb.mxu3 %v1201_v22  ;;  %v1481_v22 = vor.u32 %v1730_v10, %v1478_v11  ;;  %v1696_v28 = vld [vmem:[#allocation5 + $0x164] sm:$0xf]  ;;  %v1233_v31 = vor.u32 %v1668_v18, %v1230_v19  ;;  %v2021_v37 = vpack.c.bf16 %v107_v27, %v107_v27  ;;  %v1406_v39 = vld [vmem:[#allocation5 + $0x1e8] sm:$0xf0]  ;;  %v1334_v45 = vld [vmem:[#allocation5 + $0x158] sm:$0xf0] }
  0x49   :  { %782 = vmatpush.bf16.msrb.mxu1 %v1517_v29  ;;  %v1342_v29 = vld [vmem:[#allocation5 + $0x168] sm:$0xf0]  ;;  %v1728_v32 = vld [vmem:[#allocation5 + $0x264] sm:$0xf]  ;;  %v1726_v46 = vld [vmem:[#allocation5 + $0x254] sm:$0xf] }
  0x4a   :  { %770 = vmatpush.bf16.msrb.mxu0 %v1445_v34  ;;  %1554 = vmatmul.msk.bf16.vlgmr.msrb.gmra.mxu2 %vm710_vm0, %v2015_v43  ;;  %v1417_v34 = vor.u32 %v1714_v20, %v1414_v23  ;;  %v1712_v36 = vld [vmem:[#allocation5 + $0x1e4] sm:$0xf]  ;;  %v1345_v38 = vor.u32 %v1696_v28, %v1342_v29  ;;  %v1534_v41 = vld [vmem:[#allocation5 + $0x2e8] sm:$0xf0]  ;;  %v1710_v50 = vld [vmem:[#allocation5 + $0x1d4] sm:$0xf] }
  0x4b   :  { %821 = vmatpush.bf16.msra.mxu2 %v1265_v30  ;;  %v2019_v30 = vpack.c.bf16 %v106_v15, %v106_v15  ;;  %v1744_v40 = vld [vmem:[#allocation5 + $0x2e4] sm:$0xf]  ;;  %v1398_v53 = vld [vmem:[#allocation5 + $0x1d8] sm:$0xf0]  ;;  %v1742_v54 = vld [vmem:[#allocation5 + $0x2d4] sm:$0xf] }
  0x4c   :  { %809 = vmatpush.bf16.msrb.mxu3 %v1193_v35  ;;  %v1545_v35 = vor.u32 %v1746_v24, %v1542_v25  ;;  %v1537_v49 = vor.u32 %v1744_v40, %v1534_v41  ;;  %v1526_v55 = vld [vmem:[#allocation5 + $0x2d8] sm:$0xf0]  ;;  %v1326_v59 = vld [vmem:[#allocation5 + $0x148] sm:$0xf0]  ;;  %v1724_v60 = vld [vmem:[#allocation5 + $0x244] sm:$0xf] }
  0x4d   :  { %783 = vmatpush.bf16.msrb.mxu1 %v1509_v42  ;;  %v1473_v42 = vor.u32 %v1728_v32, %v1470_v33  ;;  %v1454_v61 = vld [vmem:[#allocation5 + $0x248] sm:$0xf0]  ;;  %v1708_v2 = vld [vmem:[#allocation5 + $0x1c4] sm:$0xf]  ;;  %v1722_v9 = vld [vmem:[#allocation5 + $0x234] sm:$0xf] }
  0x4e   :  { %771 = vmatpush.bf16.msrb.mxu0 %v1437_v47  ;;  %v1462_v47 = vld [vmem:[#allocation5 + $0x258] sm:$0xf0]  ;;  %v1390_v4 = vld [vmem:[#allocation5 + $0x1c8] sm:$0xf0]  ;;  %v1740_v5 = vld [vmem:[#allocation5 + $0x2c4] sm:$0xf]  ;;  %v1457_v7 = vor.u32 %v1724_v60, %v1454_v61 }
  0x4f   :  { %822 = vmatpush.bf16.msra.mxu2 %v1257_v44  ;;  %v1694_v44 = vld [vmem:[#allocation5 + $0x154] sm:$0xf]  ;;  %v1518_v6 = vld [vmem:[#allocation5 + $0x2c8] sm:$0xf0]  ;;  %v1446_v10 = vld [vmem:[#allocation5 + $0x238] sm:$0xf0]  ;;  %v1393_v11 = vor.u32 %v1708_v2, %v1390_v4 }
  0x50   :  { %810 = vmatpush.bf16.msrb.mxu3 %v1185_v48  ;;  %v1409_v48 = vor.u32 %v1712_v36, %v1406_v39  ;;  %v1337_v52 = vor.u32 %v1694_v44, %v1334_v45  ;;  %v1382_v14 = vld [vmem:[#allocation5 + $0x1b8] sm:$0xf0]  ;;  %v1738_v15 = vld [vmem:[#allocation5 + $0x2b4] sm:$0xf]  ;;  %v1688_v18 = vld [vmem:[#allocation5 + $0x124] sm:$0xf] }
  0x51   :  { %784 = vmatpush.bf16.msrb.mxu1 %v1501_v57  ;;  %v1465_v57 = vor.u32 %v1726_v46, %v1462_v47  ;;  %v1310_v19 = vld [vmem:[#allocation5 + $0x128] sm:$0xf0]  ;;  %v1720_v20 = vld [vmem:[#allocation5 + $0x224] sm:$0xf]  ;;  %v1302_v32 = vld [vmem:[#allocation5 + $0x118] sm:$0xf0] }
  0x52   :  { %772 = vmatpush.bf16.msrb.mxu0 %v1429_v62  ;;  %v1401_v62 = vor.u32 %v1710_v50, %v1398_v53  ;;  %v1704_v24 = vld [vmem:[#allocation5 + $0x1a4] sm:$0xf]  ;;  %v1313_v25 = vor.u32 %v1688_v18, %v1310_v19  ;;  %v1502_v28 = vld [vmem:[#allocation5 + $0x2a8] sm:$0xf0]  ;;  %v1718_v33 = vld [vmem:[#allocation5 + $0x214] sm:$0xf] }
  0x53   :  { %823 = vmatpush.bf16.msra.mxu2 %v1249_v58  ;;  %v1692_v58 = vld [vmem:[#allocation5 + $0x144] sm:$0xf]  ;;  %v1366_v40 = vld [vmem:[#allocation5 + $0x198] sm:$0xf0]  ;;  %v1734_v41 = vld [vmem:[#allocation5 + $0x294] sm:$0xf] }
  0x54   :  { %811 = vmatpush.bf16.msrb.mxu3 %v1177_v63  ;;  %v1529_v63 = vor.u32 %v1742_v54, %v1526_v55  ;;  %v1329_v3 = vor.u32 %v1692_v58, %v1326_v59  ;;  %v1736_v27 = vld [vmem:[#allocation5 + $0x2a4] sm:$0xf]  ;;  %v1294_v46 = vld [vmem:[#allocation5 + $0x108] sm:$0xf0]  ;;  %v1755_v4 = vld [vmem:[#allocation8 + $0x28] sm:$0xff] }
  0x55   :  { %785 = vmatpush.bf16.msrb.mxu1 %v1493_v8  ;;  %v1690_v8 = vld [vmem:[#allocation5 + $0x134] sm:$0xf]  ;;  %v1505_v36 = vor.u32 %v1736_v27, %v1502_v28  ;;  %v1684_v45 = vld [vmem:[#allocation5 + $0x104] sm:$0xf]  ;;  %v1358_v54 = vld [vmem:[#allocation5 + $0x188] sm:$0xf0] }
  0x56   :  { %773 = vmatpush.bf16.msrb.mxu0 %v1421_v16  ;;  %v1510_v16 = vld [vmem:[#allocation5 + $0x2b8] sm:$0xf0]  ;;  %v1716_v47 = vld [vmem:[#allocation5 + $0x204] sm:$0xf]  ;;  %v1486_v58 = vld [vmem:[#allocation5 + $0x288] sm:$0xf0] }
  0x57   :  { %824 = vmatpush.bf16.msra.mxu2 %v1241_v12  ;;  %v1706_v12 = vld [vmem:[#allocation5 + $0x1b4] sm:$0xf]  ;;  %v1513_v23 = vor.u32 %v1738_v15, %v1510_v16  ;;  %v1700_v53 = vld [vmem:[#allocation5 + $0x184] sm:$0xf]  ;;  %v1550_v60 = vld [vmem:[#allocation5 + $0x308] sm:$0xf0] }
  0x58   :  { %812 = vmatpush.bf16.msrb.mxu3 %v1169_v17  ;;  %v1449_v17 = vor.u32 %v1722_v9, %v1446_v10  ;;  %v1748_v59 = vld [vmem:[#allocation5 + $0x304] sm:$0xf]  ;;  %v1361_v61 = vor.u32 %v1700_v53, %v1358_v54  ;;  %v1757_v2 = vld [vmem:[#allocation8 + $0x38] sm:$0xff] }
  0x59   :  { %786 = vmatpush.bf16.msrb.mxu1 %v1485_v26  ;;  %774 = vmatmul.bf16.vlgmr.msrb.gmra.mxu0 %v2019_v30  ;;  %v1374_v26 = vld [vmem:[#allocation5 + $0x1a8] sm:$0xf0] }
  0x5a   :  { %831 = vmatpush.bf16.msra.mxu0 %v1353_v21  ;;  %v1438_v21 = vld [vmem:[#allocation5 + $0x228] sm:$0xf0] }
  0x5b   :  { %825 = vmatpush.bf16.msra.mxu2 %v1233_v31  ;;  %813 = vmatmul.bf16.vlgmr.msrb.gmra.mxu3 %v2005_v56  ;;  %v1521_v56 = vor.u32 %v1740_v5, %v1518_v6  ;;  %v1441_v29 = vor.u32 %v1720_v20, %v1438_v21  ;;  %v1686_v31 = vld [vmem:[#allocation5 + $0x114] sm:$0xf]  ;;  %v1751_v6 = vld [vmem:[#allocation8 + $0x8] sm:$0xff] }
  0x5c   :  { %857 = vmatpush.bf16.msra.mxu3 %v1481_v22  ;;  %787 = vmatmul.bf16.vlgmr.msrb.gmra.mxu1 %v2021_v37  ;;  %v1385_v22 = vor.u32 %v1706_v12, %v1382_v14  ;;  %v1305_v39 = vor.u32 %v1686_v31, %v1302_v32  ;;  %v1754_v5 = vld [vmem:[#allocation8 + $0x20] sm:$0xff] }
  0x5d   :  { %844 = vmatpush.bf16.msra.mxu1 %v1417_v34  ;;  %v1430_v34 = vld [vmem:[#allocation5 + $0x218] sm:$0xf0] }
  0x5e   :  { %832 = vmatpush.bf16.msra.mxu0 %v1345_v38  ;;  %826 = vmatmul.bf16.vlgmr.msra.gmra.mxu2 %v2009_v1  ;;  %v1318_v1 = vld [vmem:[#allocation5 + $0x138] sm:$0xf0]  ;;  %v1702_v38 = vld [vmem:[#allocation5 + $0x194] sm:$0xf]  ;;  %v1433_v44 = vor.u32 %v1718_v33, %v1430_v34 }
  0x5f   :  { %870 = vmatpush.bf16.msrb.mxu2 %v1545_v35  ;;  %v1321_v13 = vor.u32 %v1690_v8, %v1318_v1  ;;  %v1377_v35 = vor.u32 %v1704_v24, %v1374_v26  ;;  %v1763_v26 = vld [vmem:[#allocation8 + $0x68] sm:$0xff] }
  0x60   :  { %858 = vmatpush.bf16.msra.mxu3 %v1473_v42  ;;  %v1494_v42 = vld [vmem:[#allocation5 + $0x298] sm:$0xf0] }
  0x61   :  { %845 = vmatpush.bf16.msra.mxu1 %v1409_v48  ;;  %v1422_v48 = vld [vmem:[#allocation5 + $0x208] sm:$0xf0]  ;;  %v1497_v50 = vor.u32 %v1734_v41, %v1494_v42  ;;  %v1758_v41 = vld [vmem:[#allocation8 + $0x40] sm:$0xff] }
  0x62   :  { %833 = vmatpush.bf16.msra.mxu0 %v1337_v52  ;;  %v1297_v52 = vor.u32 %v1684_v45, %v1294_v46  ;;  %v1425_v55 = vor.u32 %v1716_v47, %v1422_v48 }
  0x63   :  { %871 = vmatpush.bf16.msrb.mxu2 %v1537_v49  ;;  %v1369_v49 = vor.u32 %v1702_v38, %v1366_v40  ;;  %v1759_v40 = vld [vmem:[#allocation8 + $0x48] sm:$0xff] }
  0x64   :  { %859 = vmatpush.bf16.msra.mxu3 %v1465_v57  ;;  %v1732_v57 = vld [vmem:[#allocation5 + $0x284] sm:$0xf] }
  0x65   :  { %846 = vmatpush.bf16.msra.mxu1 %v1401_v62  ;;  %v1489_v62 = vor.u32 %v1732_v57, %v1486_v58 }
  0x66   :  { %834 = vmatpush.bf16.msra.mxu0 %v1329_v3  ;;  %v1756_v3 = vld [vmem:[#allocation8 + $0x30] sm:$0xff] }
  0x67   :  { %872 = vmatpush.bf16.msrb.mxu2 %v1529_v63  ;;  %v1553_v63 = vor.u32 %v1748_v59, %v1550_v60 }
  0x68   :  { %860 = vmatpush.bf16.msra.mxu3 %v1457_v7 }
  0x69   :  { %847 = vmatpush.bf16.msra.mxu1 %v1393_v11 }
  0x6a   :  { %835 = vmatpush.bf16.msra.mxu0 %v1321_v13 }
  0x6b   :  { %873 = vmatpush.bf16.msrb.mxu2 %v1521_v56 }
  0x6c   :  { %861 = vmatpush.bf16.msra.mxu3 %v1449_v17  ;;  %v1765_v17 = vld [vmem:[#allocation8 + $0x78] sm:$0xff] }
  0x6d   :  { %848 = vmatpush.bf16.msra.mxu1 %v1385_v22  ;;  %v1764_v22 = vld [vmem:[#allocation8 + $0x70] sm:$0xff] }
  0x6e   :  { %836 = vmatpush.bf16.msra.mxu0 %v1313_v25 }
  0x6f   :  { %874 = vmatpush.bf16.msrb.mxu2 %v1513_v23 }
  0x70   :  { %862 = vmatpush.bf16.msra.mxu3 %v1441_v29  ;;  %v1762_v29 = vld [vmem:[#allocation8 + $0x60] sm:$0xff] }
  0x71   :  { %849 = vmatpush.bf16.msra.mxu1 %v1377_v35  ;;  %v1761_v35 = vld [vmem:[#allocation8 + $0x58] sm:$0xff] }
  0x72   :  { %837 = vmatpush.bf16.msra.mxu0 %v1305_v39 }
  0x73   :  { %875 = vmatpush.bf16.msrb.mxu2 %v1505_v36  ;;  %v1760_v36 = vld [vmem:[#allocation8 + $0x50] sm:$0xff] }
  0x74   :  { %863 = vmatpush.bf16.msra.mxu3 %v1433_v44 }
  0x75   :  { %850 = vmatpush.bf16.msra.mxu1 %v1369_v49 }
  0x76   :  { %838 = vmatpush.bf16.msra.mxu0 %v1297_v52 }
  0x77   :  { %876 = vmatpush.bf16.msrb.mxu2 %v1497_v50 }
  0x78   :  { %864 = vmatpush.bf16.msra.mxu3 %v1425_v55 }
  0x79   :  { %851 = vmatpush.bf16.msra.mxu1 %v1361_v61  ;;  %839 = vmatmul.bf16.vlgmr.msra.gmra.mxu0 %v2003_v51  ;;  %v1753_v51 = vld [vmem:[#allocation8 + $0x18] sm:$0xff] }
  0x7b   :  { %865 = vmatmul.bf16.vlgmr.msra.gmra.mxu3 %v2019_v30  ;;  %877 = vmatpush.bf16.msrb.mxu2 %v1489_v62  ;;  %v1752_v30 = vld [vmem:[#allocation8 + $0x10] sm:$0xff] }
  0x7c   :  { %852 = vmatmul.bf16.vlgmr.msra.gmra.mxu1 %v2007_v0  ;;  %1045 = vmatpush.bf16.msrb.mxu3 %v1765_v17 }
  0x7d   :  { %1032 = vmatpush.bf16.msrb.mxu1 %v1757_v2 }
  0x7e   :  { %878 = vmatmul.bf16.vlgmr.msrb.gmra.mxu2 %v2021_v37  ;;  %v1750_v37 = vld [vmem:[#allocation8] sm:$0xff] }
  0x7f   :  { %890 = vmatpush.bf16.msra.mxu2 %v1553_v63 }
  0x80   :  { %1046 = vmatpush.bf16.msrb.mxu3 %v1764_v22 }
  0x81   :  { %1033 = vmatpush.bf16.msrb.mxu1 %v1756_v3  ;;  %v1773_v3 = vld [vmem:[#allocation10 + $0x38] sm:$0xff] }
  0x82   :  { %1128 = vmatpush.bf16.msrb.mxu0 %v1773_v3 }
  0x84   :  { %1047 = vmatpush.bf16.msrb.mxu3 %v1763_v26 }
  0x85   :  { %1034 = vmatpush.bf16.msrb.mxu1 %v1755_v4  ;;  %v1772_v4 = vld [vmem:[#allocation10 + $0x30] sm:$0xff] }
  0x86   :  { %1129 = vmatpush.bf16.msrb.mxu0 %v1772_v4 }
  0x88   :  { %1048 = vmatpush.bf16.msrb.mxu3 %v1762_v29 }
  0x89   :  { %1035 = vmatpush.bf16.msrb.mxu1 %v1754_v5  ;;  %v1771_v5 = vld [vmem:[#allocation10 + $0x28] sm:$0xff] }
  0x8a   :  { %1130 = vmatpush.bf16.msrb.mxu0 %v1771_v5 }
  0x8c   :  { %1049 = vmatpush.bf16.msrb.mxu3 %v1761_v35 }
  0x8d   :  { %1036 = vmatpush.bf16.msrb.mxu1 %v1753_v51  ;;  %v1770_v51 = vld [vmem:[#allocation10 + $0x20] sm:$0xff] }
  0x8e   :  { %1555 = vmatmul.msk.bf16.vlgmr.msra.gmra.mxu2 %vm710_vm0, %v2015_v43  ;;  %v214_v43 = vld [vmem:[#allocation7] sm:$0x3]  ;;  %1131 = vmatpush.bf16.msrb.mxu0 %v1770_v51 }
  0x8f   :  { %v216_v11 = vperm.slane %v214_v43, 0  ;;  %v217_v45 = vperm.slane %v214_v43, 1  ;;  %v1784_v43 = vld [vmem:[%s2046_s4] ss:$0 sm:$0xff] }
  0x90   :  { %1050 = vmatpush.bf16.msrb.mxu3 %v1760_v36 }
  0x91   :  { %1037 = vmatpush.bf16.msrb.mxu1 %v1752_v30  ;;  %v1769_v30 = vld [vmem:[#allocation10 + $0x18] sm:$0xff] }
  0x92   :  { %1132 = vmatpush.bf16.msrb.mxu0 %v1769_v30 }
  0x94   :  { %1051 = vmatpush.bf16.msrb.mxu3 %v1759_v40 }
  0x95   :  { %1038 = vmatpush.bf16.msrb.mxu1 %v1751_v6  ;;  %v1768_v6 = vld [vmem:[#allocation10 + $0x10] sm:$0xff] }
  0x96   :  { %1133 = vmatpush.bf16.msrb.mxu0 %v1768_v6 }
  0x98   :  { %1052 = vmatpush.bf16.msrb.mxu3 %v1758_v41 }
  0x99   :  { %1039 = vmatpush.bf16.msrb.mxu1 %v1750_v37  ;;  %v1767_v37 = vld [vmem:[#allocation10 + $0x8] sm:$0xff] }
  0x9a   :  { %1134 = vmatpush.bf16.msrb.mxu0 %v1767_v37 }
  0xb6   :  { %v723_v7 = vpop.f32.mrf.mxu0 }
  0xb7   :  { %v724_v12 = vadd.f32 %v723_v7, %v216_v11 }
  0xb9   :  { %v736_v0 = vpop.f32.mrf.mxu1 }
  0xba   :  { %v737_v14 = vadd.f32 %v736_v0, %v724_v12 }
  0xbd   :  { %v749_v8 = vpop.f32.mrf.mxu2 }
  0xbe   :  { %v762_v1 = vpop.f32.mrf.mxu3  ;;  %v725_v9 = vpop.f32.mrf.mxu0  ;;  %v750_v16 = vadd.f32 %v749_v8, %v737_v14  ;;  %v1766_v8 = vld [vmem:[#allocation10] sm:$0xff] }
  0xbf   :  { %1135 = vmatpush.bf16.msrb.mxu0 %v1766_v8 }
  0xc0   :  { %v763_v18 = vadd.f32 %v762_v1, %v750_v16 }
  0xc1   :  { %v738_v10 = vpop.f32.mrf.mxu1 }
  0xc5   :  { %v751_v56 = vpop.f32.mrf.mxu2 }
  0xc6   :  { %v764_v13 = vpop.f32.mrf.mxu3 }
  0xc7   :  { %v1785_v13 = vld [vmem:[%s2048_s6] ss:$0 sm:$0xff] }
  0xcd   :  { %v801_v15 = vpop.f32.mrf.mxu2 }
  0xd5   :  { %v803_v21 = vpop.f32.mrf.mxu2 }
  0xd6   :  { %v775_v19 = vpop.f32.mrf.mxu0 }
  0xd7   :  { %v776_v20 = vadd.f32 %v775_v19, %v763_v18 }
  0xd9   :  { %v788_v23 = vpop.f32.mrf.mxu1 }
  0xda   :  { %v789_v24 = vadd.f32 %v788_v23, %v776_v20 }
  0xdc   :  { %v802_v25 = vadd.f32 %v801_v15, %v789_v24 }
  0xde   :  { %v896_v27 = vmax.f32 %v802_v25, 0.0  ;;  %v777_v28 = vpop.f32.mrf.mxu0  ;;  %v814_v33 = vpop.f32.mrf.mxu3 }
  0xdf   :  { %v815_v48 = vadd.f32 %v814_v33, %v217_v45 }
  0xe0   :  { %v898_v31 = vpack.c.bf16 %v896_v27, %v896_v27 }
  0xe1   :  { %v827_v32 = vpop.f32.mrf.mxu2  ;;  %v790_v34 = vpop.f32.mrf.mxu1 }
  0xe2   :  { %1040 = vmatmul.bf16.vlgmr.msrb.gmra.mxu1 %v898_v31  ;;  %v828_v52 = vadd.f32 %v827_v32, %v815_v48 }
  0xe6   :  { %v816_v39 = vpop.f32.mrf.mxu3 }
  0xe9   :  { %v829_v38 = vpop.f32.mrf.mxu2 }
  0xf6   :  { %v840_v42 = vpop.f32.mrf.mxu0 }
  0xf7   :  { %v841_v53 = vadd.f32 %v840_v42, %v828_v52 }
  0xf9   :  { %v853_v44 = vpop.f32.mrf.mxu1 }
  0xfa   :  { %v854_v57 = vadd.f32 %v853_v44, %v841_v53 }
  0xfe   :  { %v866_v46 = vpop.f32.mrf.mxu3  ;;  %v842_v47 = vpop.f32.mrf.mxu0 }
  0xff   :  { %v867_v58 = vadd.f32 %v866_v46, %v854_v57 }
 0x101   :  { %v879_v49 = vpop.f32.mrf.mxu2  ;;  %v855_v50 = vpop.f32.mrf.mxu1 }
 0x102   :  { %v880_v59 = vadd.f32 %v879_v49, %v867_v58 }
 0x106   :  { %v868_v54 = vpop.f32.mrf.mxu3 }
 0x109   :  { %v881_v55 = vpop.f32.mrf.mxu2 }
 0x111   :  { %v892_v60 = vpop.f32.mrf.mxu2 }
 0x112   :  { %v893_v61 = vadd.f32 %v892_v60, %v880_v59 }
 0x114   :  { %v897_v62 = vmax.f32 %v893_v61, 0.0 }
 0x116   :  { %v899_v63 = vpack.c.bf16 %v897_v62, %v897_v62 }
 0x118   :  { %1053 = vmatmul.bf16.vlgmr.msrb.gmra.mxu3 %v899_v63 }
 0x119   :  { %v894_v2 = vpop.f32.mrf.mxu2 }
 0x15f   :  { %v1041_v7 = vpop.f32.mrf.mxu1 }
 0x160   :  { %v1042_v1 = vadd.f32 %v1784_v43, %v1041_v7 }
 0x167   :  { %v1043_v0 = vpop.f32.mrf.mxu1 }
 0x19b   :  { %v1054_v9 = vpop.f32.mrf.mxu3 }
 0x19c   :  { %v1055_v10 = vadd.f32 %v1054_v9, %v1042_v1 }
 0x19e   :  { %v1058_v11 = vmax.f32 %v1055_v10, 0.0 }
 0x1a0   :  { %v1059_v56 = vpack.c.bf16 %v1058_v11, %v1058_v11 }
 0x1a2   :  { %1136 = vmatmul.bf16.vlgmr.msrb.gmra.mxu0 %v1059_v56 }
 0x1a3   :  { %v1056_v12 = vpop.f32.mrf.mxu3 }
 0x21f   :  { %v1137_v14 = vpop.f32.mrf.mxu0 }
 0x220   :  { %v1138_v15 = vadd.f32 %v1785_v13, %v1137_v14 }
 0x222   :  { %v1141_v16 = vpack.c.bf16 %v1138_v15, %v1138_v15 }
 0x224   :  { %1142 = vst [vmem:[#allocation11] sm:$0xf] %v1141_v16 }
 0x225   :  { %1153 = dma.vmem_to_hbm [thread:$0]  %s1149_s30, 64, %s1151_s10, [#allocation4]  }
 0x227   :  { %v1139_v17 = vpop.f32.mrf.mxu0 }
 0x228   :  { %1936 = dma.done.wait [#allocation4], 64  }
 0x229   :  { %1937 = vsyncadd [#allocation4], 4294967232 }
 0x22a   :  { %1158 = vsyncpa [#allocation3], 1 }
 0x22b   :  { %1159 = vsyncpa [#allocation6], 1 }
 0x22c   :  { %1160 = vsyncpa [#allocation9], 1 }
 0x22d   :  { %1161 = vsyncpa [#allocation4], 1 }

</bundles_post_ra>
